<compile_context>
chip_gen: v5e
topology: v5e:2x2
jax: 0.10.0
libtpu: 0.0.40
codegen_flags: <defaults>
</compile_context>

<pallas_src>
import functools

import jax
import jax.numpy as jnp
from jax import lax
from jax.experimental import pallas as pl
from jax.experimental.pallas import tpu as pltpu


def _cdiv(a, b):
    return -(-a // b)


def _round_up(a, m):
    return _cdiv(a, m) * m


def _vmem_capacity_bytes():
    """Physical VMEM per TensorCore; conservative fallback if undetectable."""
    try:
        info = pltpu.get_tpu_info()
        cap = getattr(info, "vmem_capacity_bytes", None)
        if cap:
            return int(cap)
    except Exception:
        pass
    return 64 * 1024 * 1024  # v7x-sized fallback (safe lower bound)


def _gram_kernel_full(f_ref, g_ref, *, inv_total):
    """Grid = (nk,). Resident (Np, Np) f32 accumulator; F streamed exactly once."""
    k = pl.program_id(0)
    nk = pl.num_programs(0)
    f = f_ref[...]                                    # (Np, tk), native dtype
    # F @ F.T without materializing a transpose: contract last dims of both.
    partial = lax.dot_general(
        f, f, dimension_numbers=(((1,), (1,)), ((), ())),
        preferred_element_type=jnp.float32)           # (Np, Np) f32

    @pl.when(k == 0)
    def _init():
        g_ref[...] = partial

    @pl.when(k > 0)
    def _accumulate():
        g_ref[...] += partial

    @pl.when(k == nk - 1)
    def _finalize():
        g_ref[...] = g_ref[...] * inv_total


def _gram_kernel_rows(lhs_ref, rhs_ref, g_ref, *, inv_total):
    """Grid = (row_blocks, nk).  Fallback for very large channel counts where
    the full (Np, Np) accumulator does not fit the VMEM budget.  The LHS row
    block is DMA'd via its own BlockSpec (no in-kernel dynamic slicing)."""
    k = pl.program_id(1)
    nk = pl.num_programs(1)
    partial = lax.dot_general(
        lhs_ref[...], rhs_ref[...],
        dimension_numbers=(((1,), (1,)), ((), ())),
        preferred_element_type=jnp.float32)           # (tn, Np) f32

    @pl.when(k == 0)
    def _init():
        g_ref[...] = partial

    @pl.when(k > 0)
    def _accumulate():
        g_ref[...] += partial

    @pl.when(k == nk - 1)
    def _finalize():
        g_ref[...] = g_ref[...] * inv_total


def gram_matrix(x, *, compute_dtype=None, row_blocks=None, max_tk=None,
                vmem_budget_bytes=None):
    """Pallas Gram matrix with the PyTorch StyleLoss convention:
         G = F @ F.T / (a*b*c*d),  F = x.reshape(a*b, c*d)."""
    a, b, c, d = x.shape
    N, M = a * b, c * d
    inv_total = 1.0 / float(N * M)

    dtype = jnp.dtype(compute_dtype) if compute_dtype is not None else jnp.dtype(x.dtype)
    itemsize = dtype.itemsize

    cap = _vmem_capacity_bytes()
    if vmem_budget_bytes is None:
        vmem_budget_bytes = int(cap * 0.75)   # ~96 MiB on v5e/v6e, ~48 MiB on v7x
    if max_tk is None:
        max_tk = 32768 if cap >= 128 * 1024 * 1024 else 16384

    # Lane-dense Gram output: pad channel rows to a multiple of 128
    # (zero rows contribute zero to G and are sliced off at the end).
    Np = _round_up(max(N, 128), 128)

    # Row split only when the resident double-buffered accumulator would not
    # leave room for at least a (Np, 128) F tile in the VMEM budget.
    if row_blocks is None:
        row_blocks = 1
        while True:
            tn = Np // row_blocks
            need = (2 * tn * Np * 4                           # G accumulator (dbl buf)
                    + 2 * Np * 128 * itemsize                 # minimal rhs tile
                    + (2 * tn * 128 * itemsize if row_blocks > 1 else 0))
            if need <= vmem_budget_bytes:
                break
            nxt = row_blocks * 2
            if Np % nxt != 0 or (Np // nxt) % 8 != 0:
                break
            row_blocks = nxt
    tn = Np // row_blocks
    assert Np % row_blocks == 0 and tn % 8 == 0, "invalid row_blocks for this shape"

    # K tile: as large as the budget allows (multiple of 128).
    resident = 2 * tn * Np * 4
    per_col = 2 * Np * itemsize + (2 * tn * itemsize if row_blocks > 1 else 0)
    avail = vmem_budget_bytes - resident
    tk_cap = max(128, min(max_tk, (avail // per_col) // 128 * 128))
    tk_cap = min(tk_cap, _round_up(M, 128))
    nk = _cdiv(M, tk_cap)
    tk = _round_up(_cdiv(M, nk), 128)
    Mp = nk * tk

    feats = x.reshape(N, M)
    if compute_dtype is not None and feats.dtype != dtype:
        feats = feats.astype(dtype)
    if Np != N or Mp != M:
        feats = jnp.pad(feats, ((0, Np - N), (0, Mp - M)))    # single fused pad

    usage = resident + per_col * tk
    vmem_limit = int(min(cap, max(32 * 1024 * 1024, int(usage * 1.5))))

    flops = 2 * Np * Np * Mp
    out_shape = jax.ShapeDtypeStruct((Np, Np), jnp.float32)

    if row_blocks == 1:
        # NOTE: the G out_spec is revisited across k (resident accumulator); a
        # pipeline_mode=pl.Buffered(1) there would halve its VMEM footprint, but
        # it is already accounted for conservatively in the budget above.
        bytes_accessed = Np * Mp * itemsize + Np * Np * 4
        G = pl.pallas_call(
            functools.partial(_gram_kernel_full, inv_total=inv_total),
            out_shape=out_shape,
            grid_spec=pltpu.PrefetchScalarGridSpec(
                num_scalar_prefetch=0,
                grid=(nk,),
                in_specs=[pl.BlockSpec((Np, tk), lambda k: (0, k))],
                out_specs=pl.BlockSpec((Np, Np), lambda k: (0, 0)),
            ),
            compiler_params=pltpu.CompilerParams(
                dimension_semantics=("arbitrary",),
                vmem_limit_bytes=vmem_limit),
            cost_estimate=pl.CostEstimate(flops=int(flops), transcendentals=0,
                                          bytes_accessed=int(bytes_accessed)),
        )(feats)
    else:
        # TODO(synk): on dual-TC v7x a K-split across cores with wrapper-side
        # partial summation would avoid re-reading the rhs per row block.
        bytes_accessed = (row_blocks + 1) * Np * Mp * itemsize + Np * Np * 4
        G = pl.pallas_call(
            functools.partial(_gram_kernel_rows, inv_total=inv_total),
            out_shape=out_shape,
            grid_spec=pltpu.PrefetchScalarGridSpec(
                num_scalar_prefetch=0,
                grid=(row_blocks, nk),
                in_specs=[pl.BlockSpec((tn, tk), lambda i, k: (i, k)),   # lhs rows
                          pl.BlockSpec((Np, tk), lambda i, k: (0, k))],  # all rows
                out_specs=pl.BlockSpec((tn, Np), lambda i, k: (i, 0)),
            ),
            compiler_params=pltpu.CompilerParams(
                dimension_semantics=("parallel", "arbitrary"),
                vmem_limit_bytes=vmem_limit),
            cost_estimate=pl.CostEstimate(flops=int(flops), transcendentals=0,
                                          bytes_accessed=int(bytes_accessed)),
        )(feats, feats)

    return G[:N, :N]


class StyleLossPallas:
    """Mirror of the PyTorch StyleLoss module: forward returns its input
    unchanged and stores the MSE between its Gram matrix and the target's."""

    def __init__(self, target_feature):
        # target = gram_matrix(target_feature).detach()
        self.target = gram_matrix(target_feature)
        self.loss = None

    def __call__(self, x):
        G = gram_matrix(x)
        # The MSE touches only N^2 elements (negligible vs streaming N*M);
        # computed in XLA per the perf review to free VMEM for larger K tiles.
        diff = G - self.target
        self.loss = jnp.mean(diff * diff)
        return x


if __name__ == "__main__":
    key = jax.random.PRNGKey(0)
    k_tgt, k_in = jax.random.split(key)

    # Small shapes consistent with NCHW conv features: (a=2, b=4, c=16, d=16)
    target_feature = jax.random.normal(k_tgt, (2, 4, 16, 16), jnp.float32)
    x = jax.random.normal(k_in, (2, 4, 16, 16), jnp.float32)

    module = StyleLossPallas(target_feature)
    out = jax.block_until_ready(module(x))
    loss = jax.block_until_ready(module.loss)

    # Plain-JAX reference (full-precision gram + mse).
    def ref_gram(t):
        ra, rb, rc, rd = t.shape
        f = t.reshape(ra * rb, rc * rd)
        return jnp.dot(f, f.T, precision=lax.Precision.HIGHEST) / (ra * rb * rc * rd)

    ref_target = ref_gram(target_feature)
    ref_x = ref_gram(x)
    ref_loss = jnp.mean((ref_x - ref_target) ** 2)

    assert jnp.allclose(out, x), "forward must return its input unchanged"
    assert jnp.allclose(module.target, ref_target, rtol=1e-4, atol=1e-5)
    assert jnp.allclose(loss, ref_loss, rtol=1e-3, atol=1e-8), (loss, ref_loss)

    # Exercise the row-split fallback path (used only for huge channel counts).
    G_rows = jax.block_until_ready(gram_matrix(x, row_blocks=4))
    assert jnp.allclose(G_rows, ref_x, rtol=1e-4, atol=1e-5)

    # Exercise the optional bf16 streaming path (f32 MXU accumulation).
    G_bf16 = jax.block_until_ready(gram_matrix(x, compute_dtype=jnp.bfloat16))
    f_bf = x.reshape(8, 256).astype(jnp.bfloat16).astype(jnp.float32)
    ref_bf = jnp.dot(f_bf, f_bf.T, precision=lax.Precision.HIGHEST) / float(x.size)
    assert jnp.allclose(G_bf16, ref_bf, rtol=1e-4, atol=1e-5)

    print("KERNEL_OK")
</pallas_src>

<mosaic_0001>
module attributes {stable_mosaic.version = 11 : i64} {
  func.func @_gram_kernel_full(%arg0: i32, %arg1: memref<128x256xf32, #tpu.memory_space<vmem>>, %arg2: memref<128x128xf32, #tpu.memory_space<vmem>>) attributes {dimension_semantics = [#tpu.dimension_semantics<arbitrary>], iteration_bounds = array<i64: 1>, scalar_prefetch = 0 : i64, scratch_operands = 0 : i64, tpu.core_type = #tpu.core_type<tc>, window_params = [{transform_indices = @transform_0, window_bounds = array<i64: 128, 256>}, {pipeline_mode = #tpu.pipeline_mode<synchronous>, transform_indices = @transform_1, window_bounds = array<i64: 128, 128>}]} {
    %c0 = arith.constant 0 : index
    %c0_0 = arith.constant 0 : index
    %0 = vector.load %arg1[%c0, %c0_0] : memref<128x256xf32, #tpu.memory_space<vmem>>, vector<128x256xf32>
    %cst = arith.constant dense<0.000000e+00> : vector<128x128xf32>
    %1 = tpu.matmul %0, %0, %cst {dimension_numbers = #tpu.dot_dimension_numbers<[1], [1], [0], [0], [0, 0, 1, 0], [], []>} : vector<128x256xf32>, vector<128x256xf32>, vector<128x128xf32> -> vector<128x128xf32>
    %c0_i32 = arith.constant 0 : i32
    %2 = arith.cmpi eq, %arg0, %c0_i32 : i32
    %3 = arith.extui %2 : i1 to i32
    %c0_i32_1 = arith.constant 0 : i32
    %4 = arith.cmpi ne, %3, %c0_i32_1 : i32
    scf.if %4 {
      %c0_6 = arith.constant 0 : index
      %c0_7 = arith.constant 0 : index
      %11 = vector.load %arg2[%c0_6, %c0_7] : memref<128x128xf32, #tpu.memory_space<vmem>>, vector<128x128xf32>
      tpu.vector_store %arg2[%c0_6, %c0_7], %1 {strides = array<i32>} : memref<128x128xf32, #tpu.memory_space<vmem>>, vector<128x128xf32>,
    } else {
    }
    %c0_i32_2 = arith.constant 0 : i32
    %5 = arith.cmpi sgt, %arg0, %c0_i32_2 : i32
    %6 = arith.extui %5 : i1 to i32
    %c0_i32_3 = arith.constant 0 : i32
    %7 = arith.cmpi ne, %6, %c0_i32_3 : i32
    scf.if %7 {
      %c0_6 = arith.constant 0 : index
      %c0_7 = arith.constant 0 : index
      %11 = vector.load %arg2[%c0_6, %c0_7] : memref<128x128xf32, #tpu.memory_space<vmem>>, vector<128x128xf32>
      %12 = arith.addf %11, %1 : vector<128x128xf32>
      %c0_8 = arith.constant 0 : index
      %c0_9 = arith.constant 0 : index
      %13 = vector.load %arg2[%c0_8, %c0_9] : memref<128x128xf32, #tpu.memory_space<vmem>>, vector<128x128xf32>
      tpu.vector_store %arg2[%c0_8, %c0_9], %12 {strides = array<i32>} : memref<128x128xf32, #tpu.memory_space<vmem>>, vector<128x128xf32>,
    } else {
    }
    %c0_i32_4 = arith.constant 0 : i32
    %8 = arith.cmpi eq, %arg0, %c0_i32_4 : i32
    %9 = arith.extui %8 : i1 to i32
    %c0_i32_5 = arith.constant 0 : i32
    %10 = arith.cmpi ne, %9, %c0_i32_5 : i32
    scf.if %10 {
      %c0_6 = arith.constant 0 : index
      %c0_7 = arith.constant 0 : index
      %11 = vector.load %arg2[%c0_6, %c0_7] : memref<128x128xf32, #tpu.memory_space<vmem>>, vector<128x128xf32>
      %cst_8 = arith.constant 4.8828125E-4 : f32
      %12 = vector.broadcast %cst_8 : f32 to vector<128x128xf32>
      %13 = arith.mulf %11, %12 : vector<128x128xf32>
      %c0_9 = arith.constant 0 : index
      %c0_10 = arith.constant 0 : index
      %14 = vector.load %arg2[%c0_9, %c0_10] : memref<128x128xf32, #tpu.memory_space<vmem>>, vector<128x128xf32>
      tpu.vector_store %arg2[%c0_9, %c0_10], %13 {strides = array<i32>} : memref<128x128xf32, #tpu.memory_space<vmem>>, vector<128x128xf32>,
    } else {
    }
    return
  }
  func.func @transform_0(%arg0: i32) -> (i32, i32) {
    %c0_i32 = arith.constant 0 : i32
    %c0_i32_0 = arith.constant 0 : i32
    return %c0_i32, %arg0 : i32, i32
  }
  func.func @transform_1(%arg0: i32) -> (i32, i32) {
    %c0_i32 = arith.constant 0 : i32
    %c0_i32_0 = arith.constant 0 : i32
    %c0_i32_1 = arith.constant 0 : i32
    return %c0_i32, %c0_i32_0 : i32, i32
  }
}

</mosaic_0001>

<bundles_post_ra>
// kernel: tpu_custom_call.1
= control target key start
LH: loop header
LB: loop body
LE: loop exit
PB: predicated region body
PF: predicated region fallthrough
CT: control target
= control target key end

     0   :  { %6 = vsyncpa [#allocation3], 0  ;;  %s531_s0 = inlined_call_operand.hbm [shape: f32[128,256], index: 0, kind: input, shape index: {}]   ;;  %s532_s1 = inlined_call_operand.hbm [shape: f32[128,128], index: 1, kind: output, shape index: {}]  }
   0x1   :  { %7 = vsyncpa [#allocation4], 0  ;;  %s12_s8 = sshll.u32 %s531_s0, 4  ;;  %s419_s9 = smov [#allocation2]   ;;  %s13_s8 = int_to_ptr.hbm [resolvable:$true] %s12_s8 }
   0x2   :  { %s14_s10 = sshll.u32 %s419_s9, 4  ;;  %s420_s11 = smov 256   ;;  %s15_s10 = int_to_ptr.vmem [resolvable:$true] %s14_s10 }
   0x3   :  { %s421_s12 = smov 16  }
   0x4   :  { %20 = dma.hbm_to_vmem [thread:$0]  %s13_s8, 4096, %s15_s10, [#allocation3], %s420_s11, %s420_s11, %s421_s12  }
   0x5   :  { %415 = dma.done.wait [#allocation3], 4096  }
   0x6   :  { %416 = vsyncadd [#allocation3], 4294963200  ;;  %v438_v0 = vld [vmem:[#allocation2 + $0xf0] sm:$0xff]  ;;  %v440_v1 = vld [vmem:[#allocation2 + $0xf8] sm:$0xff]  ;;  %s422_s0 = smov [#allocation5]   ;;  %s316_s16 = sshll.u32 %s532_s1, 4  ;;  %s317_s16 = int_to_ptr.hbm [resolvable:$true] %s316_s16 }
   0x7   :  { %329 = vmatpush.xpose.msra.mxu2 %v438_v0  ;;  %345 = vmatpush.xpose.msra.mxu3 %v440_v1  ;;  %v444_v2 = vld [vmem:[#allocation2 + $0xe0] sm:$0xff]  ;;  %v446_v3 = vld [vmem:[#allocation2 + $0xe8] sm:$0xff]  ;;  %v452_v4 = vld [vmem:[#allocation2 + $0xd0] sm:$0xff]  ;;  %s314_s13 = sshll.u32 %s422_s0, 4  ;;  %s423_s17 = smov 128   ;;  %s315_s13 = int_to_ptr.vmem [resolvable:$true] %s314_s13 }
   0x8   :  { %57 = vmatpush.xpose.msra.mxu0 %v438_v0  ;;  %122 = vmatpush.xpose.msra.mxu1 %v440_v1  ;;  %v454_v5 = vld [vmem:[#allocation2 + $0xd8] sm:$0xff]  ;;  %v460_v6 = vld [vmem:[#allocation2 + $0xc0] sm:$0xff]  ;;  %v462_v7 = vld [vmem:[#allocation2 + $0xc8] sm:$0xff]  ;;  %s424_s18 = smov 8  }
   0x9   :  { %v468_v8 = vld [vmem:[#allocation2 + $0xb0] sm:$0xff]  ;;  %v470_v9 = vld [vmem:[#allocation2 + $0xb8] sm:$0xff]  ;;  %v476_v10 = vld [vmem:[#allocation2 + $0xa0] sm:$0xff] }
   0xa   :  { %v478_v11 = vld [vmem:[#allocation2 + $0xa8] sm:$0xff]  ;;  %v484_v12 = vld [vmem:[#allocation2 + $0x90] sm:$0xff]  ;;  %v486_v13 = vld [vmem:[#allocation2 + $0x98] sm:$0xff] }
   0xb   :  { %330 = vmatpush.xpose.msra.mxu2 %v444_v2  ;;  %346 = vmatpush.xpose.msra.mxu3 %v446_v3  ;;  %v41_v14 = vld [vmem:[#allocation2 + $0x80] sm:$0xff]  ;;  %v42_v15 = vld [vmem:[#allocation2 + $0x88] sm:$0xff]  ;;  %v494_v16 = vld [vmem:[#allocation2 + $0x70] sm:$0xff] }
   0xc   :  { %58 = vmatpush.xpose.msra.mxu0 %v444_v2  ;;  %123 = vmatpush.xpose.msra.mxu1 %v446_v3  ;;  %v496_v17 = vld [vmem:[#allocation2 + $0x78] sm:$0xff]  ;;  %v500_v18 = vld [vmem:[#allocation2 + $0x60] sm:$0xff]  ;;  %v502_v19 = vld [vmem:[#allocation2 + $0x68] sm:$0xff] }
   0xd   :  { %v35_v20 = vld [vmem:[#allocation2 + $0x50] sm:$0xff]  ;;  %v36_v21 = vld [vmem:[#allocation2 + $0x58] sm:$0xff]  ;;  %v33_v22 = vld [vmem:[#allocation2 + $0x40] sm:$0xff] }
   0xe   :  { %v34_v23 = vld [vmem:[#allocation2 + $0x48] sm:$0xff]  ;;  %v31_v24 = vld [vmem:[#allocation2 + $0x30] sm:$0xff]  ;;  %v32_v25 = vld [vmem:[#allocation2 + $0x38] sm:$0xff] }
   0xf   :  { %331 = vmatpush.xpose.msra.mxu2 %v452_v4  ;;  %347 = vmatpush.xpose.msra.mxu3 %v454_v5  ;;  %v29_v26 = vld [vmem:[#allocation2 + $0x20] sm:$0xff]  ;;  %v30_v27 = vld [vmem:[#allocation2 + $0x28] sm:$0xff]  ;;  %v27_v28 = vld [vmem:[#allocation2 + $0x10] sm:$0xff] }
  0x10   :  { %59 = vmatpush.xpose.msra.mxu0 %v452_v4  ;;  %124 = vmatpush.xpose.msra.mxu1 %v454_v5  ;;  %v28_v29 = vld [vmem:[#allocation2 + $0x18] sm:$0xff]  ;;  %v25_v30 = vld [vmem:[#allocation2] sm:$0xff]  ;;  %v26_v31 = vld [vmem:[#allocation2 + $0x8] sm:$0xff] }
  0x13   :  { %332 = vmatpush.xpose.msra.mxu2 %v460_v6  ;;  %348 = vmatpush.xpose.msra.mxu3 %v462_v7 }
  0x14   :  { %60 = vmatpush.xpose.msra.mxu0 %v460_v6  ;;  %125 = vmatpush.xpose.msra.mxu1 %v462_v7 }
  0x17   :  { %333 = vmatpush.xpose.msra.mxu2 %v468_v8  ;;  %349 = vmatpush.xpose.msra.mxu3 %v470_v9 }
  0x18   :  { %61 = vmatpush.xpose.msra.mxu0 %v468_v8  ;;  %126 = vmatpush.xpose.msra.mxu1 %v470_v9 }
  0x1b   :  { %334 = vmatpush.xpose.msra.mxu2 %v476_v10  ;;  %350 = vmatpush.xpose.msra.mxu3 %v478_v11 }
  0x1c   :  { %62 = vmatpush.xpose.msra.mxu0 %v476_v10  ;;  %127 = vmatpush.xpose.msra.mxu1 %v478_v11 }
  0x1f   :  { %335 = vmatpush.xpose.msra.mxu2 %v484_v12  ;;  %351 = vmatpush.xpose.msra.mxu3 %v486_v13 }
  0x20   :  { %63 = vmatpush.xpose.msra.mxu0 %v484_v12  ;;  %128 = vmatpush.xpose.msra.mxu1 %v486_v13 }
  0x23   :  { %336 = vmatpush.xpose.msra.mxu2 %v41_v14  ;;  %352 = vmatpush.xpose.msra.mxu3 %v42_v15 }
  0x24   :  { %64 = vmatpush.xpose.msra.mxu0 %v41_v14  ;;  %129 = vmatpush.xpose.msra.mxu1 %v42_v15 }
  0x27   :  { %337 = vmatpush.xpose.msra.mxu2 %v494_v16  ;;  %353 = vmatpush.xpose.msra.mxu3 %v496_v17 }
  0x28   :  { %65 = vmatpush.xpose.msra.mxu0 %v494_v16  ;;  %130 = vmatpush.xpose.msra.mxu1 %v496_v17 }
  0x2b   :  { %338 = vmatpush.xpose.msra.mxu2 %v500_v18  ;;  %354 = vmatpush.xpose.msra.mxu3 %v502_v19 }
  0x2c   :  { %66 = vmatpush.xpose.msra.mxu0 %v500_v18  ;;  %131 = vmatpush.xpose.msra.mxu1 %v502_v19 }
  0x2f   :  { %339 = vmatpush.xpose.msra.mxu2 %v35_v20  ;;  %355 = vmatpush.xpose.msra.mxu3 %v36_v21 }
  0x30   :  { %67 = vmatpush.xpose.msra.mxu0 %v35_v20  ;;  %132 = vmatpush.xpose.msra.mxu1 %v36_v21 }
  0x33   :  { %340 = vmatpush.xpose.msra.mxu2 %v33_v22  ;;  %356 = vmatpush.xpose.msra.mxu3 %v34_v23 }
  0x34   :  { %68 = vmatpush.xpose.msra.mxu0 %v33_v22  ;;  %133 = vmatpush.xpose.msra.mxu1 %v34_v23 }
  0x37   :  { %341 = vmatpush.xpose.msra.mxu2 %v31_v24  ;;  %357 = vmatpush.xpose.msra.mxu3 %v32_v25 }
  0x38   :  { %69 = vmatpush.xpose.msra.mxu0 %v31_v24  ;;  %134 = vmatpush.xpose.msra.mxu1 %v32_v25 }
  0x3b   :  { %342 = vmatpush.xpose.msra.mxu2 %v29_v26  ;;  %358 = vmatpush.xpose.msra.mxu3 %v30_v27 }
  0x3c   :  { %70 = vmatpush.xpose.msra.mxu0 %v29_v26  ;;  %135 = vmatpush.xpose.msra.mxu1 %v30_v27 }
  0x3f   :  { %343 = vmatpush.xpose.msra.mxu2 %v27_v28  ;;  %359 = vmatpush.xpose.msra.mxu3 %v28_v29 }
  0x40   :  { %71 = vmatpush.xpose.msra.mxu0 %v27_v28  ;;  %136 = vmatpush.xpose.msra.mxu1 %v28_v29 }
  0x43   :  { %344 = vmatpush.xpose.msra.mxu2 %v25_v30  ;;  %360 = vmatpush.xpose.msra.mxu3 %v26_v31 }
  0x44   :  { %72 = vmatpush.xpose.msra.mxu0 %v25_v30  ;;  %137 = vmatpush.xpose.msra.mxu1 %v26_v31 }
  0x46   :  { %97 = vmatmul.f32.vlgmr.msra.gmra.mxu2 %v41_v14  ;;  %162 = vmatmul.f32.vlgmr.msra.gmra.mxu3 %v42_v15 }
  0x47   :  { %73 = vmatmul.f32.vlgmr.msra.gmra.mxu0 %v25_v30  ;;  %138 = vmatmul.f32.vlgmr.msra.gmra.mxu1 %v26_v31 }
  0x4e   :  { %100 = vmatmul.f32.gmra.mxu2 %v484_v12  ;;  %165 = vmatmul.f32.gmra.mxu3 %v486_v13 }
  0x4f   :  { %76 = vmatmul.f32.gmra.mxu0 %v27_v28  ;;  %141 = vmatmul.f32.gmra.mxu1 %v28_v29 }
  0x56   :  { %103 = vmatmul.f32.gmra.mxu2 %v476_v10  ;;  %168 = vmatmul.f32.gmra.mxu3 %v478_v11 }
  0x57   :  { %79 = vmatmul.f32.gmra.mxu0 %v29_v26  ;;  %144 = vmatmul.f32.gmra.mxu1 %v30_v27 }
  0x5e   :  { %106 = vmatmul.f32.gmra.mxu2 %v468_v8  ;;  %171 = vmatmul.f32.gmra.mxu3 %v470_v9 }
  0x5f   :  { %82 = vmatmul.f32.gmra.mxu0 %v31_v24  ;;  %147 = vmatmul.f32.gmra.mxu1 %v32_v25 }
  0x66   :  { %109 = vmatmul.f32.gmra.mxu2 %v460_v6  ;;  %174 = vmatmul.f32.gmra.mxu3 %v462_v7 }
  0x67   :  { %85 = vmatmul.f32.gmra.mxu0 %v33_v22  ;;  %150 = vmatmul.f32.gmra.mxu1 %v34_v23 }
  0x6e   :  { %112 = vmatmul.f32.gmra.mxu2 %v452_v4  ;;  %177 = vmatmul.f32.gmra.mxu3 %v454_v5 }
  0x6f   :  { %88 = vmatmul.f32.gmra.mxu0 %v35_v20  ;;  %153 = vmatmul.f32.gmra.mxu1 %v36_v21 }
  0x76   :  { %115 = vmatmul.f32.gmra.mxu2 %v444_v2  ;;  %180 = vmatmul.f32.gmra.mxu3 %v446_v3 }
  0x77   :  { %91 = vmatmul.f32.gmra.mxu0 %v500_v18  ;;  %156 = vmatmul.f32.gmra.mxu1 %v502_v19 }
  0x7e   :  { %118 = vmatmul.f32.gmra.mxu2 %v438_v0  ;;  %183 = vmatmul.f32.gmra.mxu3 %v440_v1 }
  0x7f   :  { %94 = vmatmul.f32.gmra.mxu0 %v494_v16  ;;  %159 = vmatmul.f32.gmra.mxu1 %v496_v17 }
  0xc4   :  { %v74_v32 = vpop.f32.mrf.mxu0  ;;  %v139_v33 = vpop.f32.mrf.mxu1 }
  0xc5   :  { %v140_v34 = vadd.f32 %v139_v33, %v74_v32 }
  0xc7   :  { %v278_v35 = vmul.f32 0.00048828125, %v140_v34 }
  0xc9   :  { %v98_v36 = vpop.f32.mrf.mxu2  ;;  %294 = vst [vmem:[#allocation5] sm:$0xff] %v278_v35  ;;  %v163_v37 = vpop.f32.mrf.mxu3 }
  0xca   :  { %v164_v38 = vadd.f32 %v163_v37, %v98_v36 }
  0xcc   :  { %v286_v39 = vmul.f32 0.00048828125, %v164_v38  ;;  %v77_v40 = vpop.f32.mrf.mxu0  ;;  %v142_v41 = vpop.f32.mrf.mxu1 }
  0xcd   :  { %v143_v42 = vadd.f32 %v142_v41, %v77_v40 }
  0xce   :  { %302 = vst [vmem:[#allocation5 + $0x40] sm:$0xff] %v286_v39 }
  0xcf   :  { %v279_v43 = vmul.f32 0.00048828125, %v143_v42 }
  0xd1   :  { %v101_v44 = vpop.f32.mrf.mxu2  ;;  %295 = vst [vmem:[#allocation5 + $0x8] sm:$0xff] %v279_v43  ;;  %v166_v45 = vpop.f32.mrf.mxu3 }
  0xd2   :  { %v167_v46 = vadd.f32 %v166_v45, %v101_v44 }
  0xd4   :  { %v287_v47 = vmul.f32 0.00048828125, %v167_v46  ;;  %v80_v48 = vpop.f32.mrf.mxu0  ;;  %v145_v49 = vpop.f32.mrf.mxu1 }
  0xd5   :  { %v146_v50 = vadd.f32 %v145_v49, %v80_v48 }
  0xd6   :  { %303 = vst [vmem:[#allocation5 + $0x48] sm:$0xff] %v287_v47 }
  0xd7   :  { %v280_v51 = vmul.f32 0.00048828125, %v146_v50 }
  0xd9   :  { %v104_v52 = vpop.f32.mrf.mxu2  ;;  %296 = vst [vmem:[#allocation5 + $0x10] sm:$0xff] %v280_v51  ;;  %v169_v53 = vpop.f32.mrf.mxu3 }
  0xda   :  { %v170_v54 = vadd.f32 %v169_v53, %v104_v52 }
  0xdc   :  { %v288_v55 = vmul.f32 0.00048828125, %v170_v54  ;;  %v83_v56 = vpop.f32.mrf.mxu0  ;;  %v148_v57 = vpop.f32.mrf.mxu1 }
  0xdd   :  { %v149_v58 = vadd.f32 %v148_v57, %v83_v56 }
  0xde   :  { %304 = vst [vmem:[#allocation5 + $0x50] sm:$0xff] %v288_v55 }
  0xdf   :  { %v281_v59 = vmul.f32 0.00048828125, %v149_v58 }
  0xe1   :  { %v107_v60 = vpop.f32.mrf.mxu2  ;;  %297 = vst [vmem:[#allocation5 + $0x18] sm:$0xff] %v281_v59  ;;  %v172_v61 = vpop.f32.mrf.mxu3 }
  0xe2   :  { %v173_v62 = vadd.f32 %v172_v61, %v107_v60 }
  0xe4   :  { %v289_v63 = vmul.f32 0.00048828125, %v173_v62  ;;  %v86_v0 = vpop.f32.mrf.mxu0  ;;  %v151_v1 = vpop.f32.mrf.mxu1 }
  0xe5   :  { %v152_v2 = vadd.f32 %v151_v1, %v86_v0 }
  0xe6   :  { %305 = vst [vmem:[#allocation5 + $0x58] sm:$0xff] %v289_v63 }
  0xe7   :  { %v282_v3 = vmul.f32 0.00048828125, %v152_v2 }
  0xe9   :  { %v110_v4 = vpop.f32.mrf.mxu2  ;;  %298 = vst [vmem:[#allocation5 + $0x20] sm:$0xff] %v282_v3  ;;  %v175_v5 = vpop.f32.mrf.mxu3 }
  0xea   :  { %v176_v6 = vadd.f32 %v175_v5, %v110_v4 }
  0xec   :  { %v290_v7 = vmul.f32 0.00048828125, %v176_v6  ;;  %v89_v8 = vpop.f32.mrf.mxu0  ;;  %v154_v9 = vpop.f32.mrf.mxu1 }
  0xed   :  { %v155_v10 = vadd.f32 %v154_v9, %v89_v8 }
  0xee   :  { %306 = vst [vmem:[#allocation5 + $0x60] sm:$0xff] %v290_v7 }
  0xef   :  { %v283_v11 = vmul.f32 0.00048828125, %v155_v10 }
  0xf1   :  { %v113_v12 = vpop.f32.mrf.mxu2  ;;  %299 = vst [vmem:[#allocation5 + $0x28] sm:$0xff] %v283_v11  ;;  %v178_v13 = vpop.f32.mrf.mxu3 }
  0xf2   :  { %v179_v14 = vadd.f32 %v178_v13, %v113_v12 }
  0xf4   :  { %v291_v15 = vmul.f32 0.00048828125, %v179_v14  ;;  %v92_v16 = vpop.f32.mrf.mxu0  ;;  %v157_v17 = vpop.f32.mrf.mxu1 }
  0xf5   :  { %v158_v18 = vadd.f32 %v157_v17, %v92_v16 }
  0xf6   :  { %307 = vst [vmem:[#allocation5 + $0x68] sm:$0xff] %v291_v15 }
  0xf7   :  { %v284_v19 = vmul.f32 0.00048828125, %v158_v18 }
  0xf9   :  { %v116_v20 = vpop.f32.mrf.mxu2  ;;  %300 = vst [vmem:[#allocation5 + $0x30] sm:$0xff] %v284_v19  ;;  %v181_v21 = vpop.f32.mrf.mxu3 }
  0xfa   :  { %v182_v22 = vadd.f32 %v181_v21, %v116_v20 }
  0xfc   :  { %v292_v23 = vmul.f32 0.00048828125, %v182_v22  ;;  %v95_v24 = vpop.f32.mrf.mxu0  ;;  %v160_v25 = vpop.f32.mrf.mxu1 }
  0xfd   :  { %v161_v26 = vadd.f32 %v160_v25, %v95_v24 }
  0xfe   :  { %308 = vst [vmem:[#allocation5 + $0x70] sm:$0xff] %v292_v23 }
  0xff   :  { %v285_v27 = vmul.f32 0.00048828125, %v161_v26 }
 0x101   :  { %v119_v28 = vpop.f32.mrf.mxu2  ;;  %301 = vst [vmem:[#allocation5 + $0x38] sm:$0xff] %v285_v27  ;;  %v184_v29 = vpop.f32.mrf.mxu3 }
 0x102   :  { %v185_v30 = vadd.f32 %v184_v29, %v119_v28 }
 0x104   :  { %v293_v31 = vmul.f32 0.00048828125, %v185_v30 }
 0x106   :  { %309 = vst [vmem:[#allocation5 + $0x78] sm:$0xff] %v293_v31 }
 0x107   :  { %322 = dma.vmem_to_hbm [thread:$0]  %s315_s13, 2048, %s317_s16, [#allocation4], %s423_s17, %s423_s17, %s424_s18  }
 0x108   :  { %417 = dma.done.wait [#allocation4], 2048  }
 0x109   :  { %418 = vsyncadd [#allocation4], 4294965248 }
 0x10a   :  { %327 = vsyncpa [#allocation3], 1 }
 0x10b   :  { %328 = vsyncpa [#allocation4], 1 }

</bundles_post_ra>
